<compile_context>
chip_gen: v6e
topology: v6e:2x2x1
jax: 0.10.0
libtpu: 0.0.40
codegen_flags: <defaults>
</compile_context>

<pallas_src>
import functools
import math

import jax
import jax.numpy as jnp
from jax.experimental import pallas as pl
from jax.experimental.pallas import tpu as pltpu


def _crelu_percent_kernel(x_ref, o_ref, *, k: int, chunk: int, acc_dtype):
    """x_ref, o_ref: (Gb, C, TILE_N). Channels on sublanes, spatial on lanes."""
    Gb, C, TN = x_ref.shape
    n_chunks = TN // chunk          # wrapper guarantees TILE_N % chunk == 0

    def process(xv):
        # xv: (C, chunk), vreg-resident.  Per lane column, count how many
        # channels are strictly greater than each element.  O(C^2) VPU work --
        # fine while C is small (op is HBM-bound there); for very large C a
        # bisection/threshold scheme would be preferable.
        cnt = jnp.zeros(xv.shape, acc_dtype)
        for j in range(C):
            xj = xv[j:j + 1, :]                        # (1, chunk) sublane bcast
            cnt = cnt + (xj > xv).astype(acc_dtype)
        # k-th largest per column = min over {x_c : fewer than k strictly
        # greater}; matches lax.top_k / torch.topk tie handling.
        thresh = jnp.min(jnp.where(cnt < k, xv, jnp.inf), axis=0, keepdims=True)
        thresh = jnp.maximum(thresh, 0.0)              # fold ReLU into threshold
        return jnp.where(xv >= thresh, xv, 0.0)

    for bi in range(Gb):                               # static, small (<= 16)
        if n_chunks == 1:
            xv = x_ref[bi].astype(acc_dtype)           # (C, TN), static slice
            o_ref[bi] = process(xv).astype(o_ref.dtype)
        else:
            @pl.loop(0, n_chunks)
            def _(ci, bi=bi):
                n0 = pl.multiple_of(ci * chunk, chunk)
                xv = x_ref[bi, :, pl.ds(n0, chunk)].astype(acc_dtype)
                o_ref[bi, :, pl.ds(n0, chunk)] = process(xv).astype(o_ref.dtype)


def _plan(G, C, N, itemsize, target_block_bytes):
    """Pick (Gb, tile_n, chunk, grid_g, grid_n) for a (G, C, N) problem."""
    # Lane chunk the kernel keeps vreg-resident: ~3 live (C, chunk) arrays of
    # 32-bit words within ~40 of the 64 vregs.
    chunk_budget = (40 * 1024) // (3 * max(1, C))
    chunk_budget = max(128, min(1024, (chunk_budget // 128) * 128))
    if N <= chunk_budget:
        chunk = N
        tile_n = N                                     # full-extent lane block
    else:
        chunk = chunk_budget                           # multiple of 128
        lanes_target = max(chunk, target_block_bytes // max(1, C * itemsize))
        n_chunks = max(1, min(lanes_target // chunk, N // chunk))
        tile_n = n_chunks * chunk                      # <= N, multiple of 128
    grid_n = pl.cdiv(N, tile_n)

    # Grow the block along the batch axis to amortize per-grid-step overhead
    # when a single (C, tile_n) slab is small (cap the static unroll at 16).
    block_bytes = C * tile_n * itemsize
    Gb = max(1, min(G, 16, target_block_bytes // max(1, block_bytes)))
    grid_g = pl.cdiv(G, Gb)
    # v7x has 2 TensorCores; keep >= 2 parallel grid steps when possible.
    if grid_g * grid_n == 1 and G > 1:
        Gb = (G + 1) // 2
        grid_g = pl.cdiv(G, Gb)
    return Gb, tile_n, chunk, grid_g, grid_n


def crelu_percent(x, percent: float = 0.5, *,
                  target_block_bytes: int = 2 << 20,
                  vmem_limit_bytes: int = 32 << 20):
    """x: (B, C, H, W) float array (NCHW, matching the PyTorch module)."""
    B, C, H, W = x.shape
    k = math.ceil(percent * C)
    HW = H * W
    itemsize = jnp.dtype(x.dtype).itemsize

    # bf16 compute is exact here (values are only compared / selected; counts
    # <= C <= 256 are exact in bf16) and runs at native VALU width on v6e/v7x.
    if x.dtype == jnp.bfloat16 and C <= 256:
        acc_dtype = jnp.bfloat16
    else:
        acc_dtype = jnp.float32

    if HW < 128 and B > 1:
        # Tiny feature maps: merge batch into the lane axis so stores stay as
        # lane-dense as possible (avoids < 128-wide masked partial stores).
        xg = jnp.transpose(x.reshape(B, C, HW), (1, 0, 2)).reshape(1, C, B * HW)
        G, N, merged = 1, B * HW, True
    else:
        # Free layout change: NCHW -> (B, C, H*W).  No transpose, no copy.
        xg = x.reshape(B, C, HW)
        G, N, merged = B, HW, False

    Gb, tile_n, chunk, grid_g, grid_n = _plan(G, C, N, itemsize,
                                              target_block_bytes)

    # Advisory cost hint so XLA schedules surrounding ops around this call.
    n_elems = G * C * N
    cost = pl.CostEstimate(flops=n_elems * (2 * C + 6), transcendentals=0,
                           bytes_accessed=2 * n_elems * itemsize)

    out = pl.pallas_call(
        functools.partial(_crelu_percent_kernel, k=k, chunk=chunk,
                          acc_dtype=acc_dtype),
        out_shape=jax.ShapeDtypeStruct((G, C, N), x.dtype),
        grid=(grid_g, grid_n),
        in_specs=[pl.BlockSpec((Gb, C, tile_n), lambda g, j: (g, 0, j))],
        out_specs=pl.BlockSpec((Gb, C, tile_n), lambda g, j: (g, 0, j)),
        compiler_params=pltpu.CompilerParams(
            dimension_semantics=("parallel", "parallel"),
            vmem_limit_bytes=vmem_limit_bytes),
        cost_estimate=cost,
    )(xg)

    if merged:
        out = jnp.transpose(out.reshape(C, B, HW), (1, 0, 2))
    return out.reshape(B, C, H, W)


def crelu_percent_reference(x, percent: float = 0.5):
    """Pure-JAX reference mirroring the PyTorch forward exactly."""
    B, C, H, W = x.shape
    k = math.ceil(percent * C)
    xf = jnp.transpose(x, (0, 2, 3, 1)).reshape(B, H * W, C)
    top_k, _ = jax.lax.top_k(xf, k)
    threshold = top_k[:, :, -1:]                       # k-th largest value
    x_filtered = jnp.where(xf >= threshold, xf, 0.0)
    x_filtered = jnp.maximum(x_filtered, 0.0)
    return jnp.transpose(x_filtered.reshape(B, H, W, C), (0, 3, 1, 2))


if __name__ == "__main__":
    # Module has no learnable parameters; only `percent` (a scalar hyperparam).
    percent = 0.5

    def check(x, msg):
        y = jax.block_until_ready(crelu_percent(x, percent))
        y_ref = crelu_percent_reference(x, percent)
        assert y.shape == x.shape, msg
        assert jnp.allclose(y.astype(jnp.float32), y_ref.astype(jnp.float32),
                            atol=1e-6, rtol=1e-6), msg

    key = jax.random.PRNGKey(0)
    k1, k2, k3, k4 = jax.random.split(key, 4)

    # 1) Primary: B=2, C=8, H=W=16 (single-chunk path, batch-blocked grid).
    check(jax.random.normal(k1, (2, 8, 16, 16), dtype=jnp.float32), "primary")
    # 2) Multi-chunk pl.loop path + partial lane block + C not a multiple of 8.
    check(jax.random.normal(k2, (1, 6, 50, 50), dtype=jnp.float32), "chunked")
    # 3) Tiny feature map (H*W < 128) -> merged lane-dense presentation.
    check(jax.random.normal(k3, (3, 8, 8, 8), dtype=jnp.float32), "merged")
    # 4) bf16 compute path (native VALU width on v6e/v7x; exact selection).
    check(jax.random.normal(k4, (2, 8, 16, 16), dtype=jnp.bfloat16), "bf16")

    print("KERNEL_OK")
</pallas_src>

<mosaic_0001>
module attributes {stable_mosaic.version = 11 : i64} {
  func.func @_crelu_percent_kernel(%arg0: i32, %arg1: i32, %arg2: memref<1x8x256xf32, #tpu.memory_space<vmem>>, %arg3: memref<1x8x256xf32, #tpu.memory_space<vmem>>) attributes {dimension_semantics = [#tpu.dimension_semantics<parallel>, #tpu.dimension_semantics<parallel>], iteration_bounds = array<i64: 2, 1>, scalar_prefetch = 0 : i64, scratch_operands = 0 : i64, tpu.core_type = #tpu.core_type<tc>, window_params = [{transform_indices = @transform_0, window_bounds = array<i64: 1, 8, 256>}, {transform_indices = @transform_1, window_bounds = array<i64: 1, 8, 256>}]} {
    %c0 = arith.constant 0 : index
    %c0_0 = arith.constant 0 : index
    %c0_1 = arith.constant 0 : index
    %0 = vector.load %arg2[%c0, %c0_0, %c0_1] : memref<1x8x256xf32, #tpu.memory_space<vmem>>, vector<1x8x256xf32>
    %1 = vector.shape_cast %0 : vector<1x8x256xf32> to vector<8x256xf32>
    %cst = arith.constant 0.000000e+00 : f32
    %2 = vector.broadcast %cst : f32 to vector<8x256xf32>
    %3 = vector.extract_strided_slice %1 {offsets = [0, 0], sizes = [1, 256], strides = [1, 1]} : vector<8x256xf32> to vector<1x256xf32>
    %4 = vector.broadcast %3 : vector<1x256xf32> to vector<8x256xf32>
    %5 = arith.cmpf ogt, %4, %1 : vector<8x256xf32>
    %6 = arith.extui %5 : vector<8x256xi1> to vector<8x256xi32>
    %7 = arith.sitofp %6 : vector<8x256xi32> to vector<8x256xf32>
    %8 = arith.addf %2, %7 : vector<8x256xf32>
    %9 = vector.extract_strided_slice %1 {offsets = [1, 0], sizes = [1, 256], strides = [1, 1]} : vector<8x256xf32> to vector<1x256xf32>
    %10 = vector.broadcast %9 : vector<1x256xf32> to vector<8x256xf32>
    %11 = arith.cmpf ogt, %10, %1 : vector<8x256xf32>
    %12 = arith.extui %11 : vector<8x256xi1> to vector<8x256xi32>
    %13 = arith.sitofp %12 : vector<8x256xi32> to vector<8x256xf32>
    %14 = arith.addf %8, %13 : vector<8x256xf32>
    %15 = vector.extract_strided_slice %1 {offsets = [2, 0], sizes = [1, 256], strides = [1, 1]} : vector<8x256xf32> to vector<1x256xf32>
    %16 = vector.broadcast %15 : vector<1x256xf32> to vector<8x256xf32>
    %17 = arith.cmpf ogt, %16, %1 : vector<8x256xf32>
    %18 = arith.extui %17 : vector<8x256xi1> to vector<8x256xi32>
    %19 = arith.sitofp %18 : vector<8x256xi32> to vector<8x256xf32>
    %20 = arith.addf %14, %19 : vector<8x256xf32>
    %21 = vector.extract_strided_slice %1 {offsets = [3, 0], sizes = [1, 256], strides = [1, 1]} : vector<8x256xf32> to vector<1x256xf32>
    %22 = vector.broadcast %21 : vector<1x256xf32> to vector<8x256xf32>
    %23 = arith.cmpf ogt, %22, %1 : vector<8x256xf32>
    %24 = arith.extui %23 : vector<8x256xi1> to vector<8x256xi32>
    %25 = arith.sitofp %24 : vector<8x256xi32> to vector<8x256xf32>
    %26 = arith.addf %20, %25 : vector<8x256xf32>
    %27 = vector.extract_strided_slice %1 {offsets = [4, 0], sizes = [1, 256], strides = [1, 1]} : vector<8x256xf32> to vector<1x256xf32>
    %28 = vector.broadcast %27 : vector<1x256xf32> to vector<8x256xf32>
    %29 = arith.cmpf ogt, %28, %1 : vector<8x256xf32>
    %30 = arith.extui %29 : vector<8x256xi1> to vector<8x256xi32>
    %31 = arith.sitofp %30 : vector<8x256xi32> to vector<8x256xf32>
    %32 = arith.addf %26, %31 : vector<8x256xf32>
    %33 = vector.extract_strided_slice %1 {offsets = [5, 0], sizes = [1, 256], strides = [1, 1]} : vector<8x256xf32> to vector<1x256xf32>
    %34 = vector.broadcast %33 : vector<1x256xf32> to vector<8x256xf32>
    %35 = arith.cmpf ogt, %34, %1 : vector<8x256xf32>
    %36 = arith.extui %35 : vector<8x256xi1> to vector<8x256xi32>
    %37 = arith.sitofp %36 : vector<8x256xi32> to vector<8x256xf32>
    %38 = arith.addf %32, %37 : vector<8x256xf32>
    %39 = vector.extract_strided_slice %1 {offsets = [6, 0], sizes = [1, 256], strides = [1, 1]} : vector<8x256xf32> to vector<1x256xf32>
    %40 = vector.broadcast %39 : vector<1x256xf32> to vector<8x256xf32>
    %41 = arith.cmpf ogt, %40, %1 : vector<8x256xf32>
    %42 = arith.extui %41 : vector<8x256xi1> to vector<8x256xi32>
    %43 = arith.sitofp %42 : vector<8x256xi32> to vector<8x256xf32>
    %44 = arith.addf %38, %43 : vector<8x256xf32>
    %45 = vector.extract_strided_slice %1 {offsets = [7, 0], sizes = [1, 256], strides = [1, 1]} : vector<8x256xf32> to vector<1x256xf32>
    %46 = vector.broadcast %45 : vector<1x256xf32> to vector<8x256xf32>
    %47 = arith.cmpf ogt, %46, %1 : vector<8x256xf32>
    %48 = arith.extui %47 : vector<8x256xi1> to vector<8x256xi32>
    %49 = arith.sitofp %48 : vector<8x256xi32> to vector<8x256xf32>
    %50 = arith.addf %44, %49 : vector<8x256xf32>
    %cst_2 = arith.constant 4.000000e+00 : f32
    %51 = vector.broadcast %cst_2 : f32 to vector<8x256xf32>
    %52 = arith.cmpf olt, %50, %51 : vector<8x256xf32>
    %cst_3 = arith.constant 0x7F800000 : f32
    %53 = vector.broadcast %cst_3 : f32 to vector<8x256xf32>
    %54 = arith.select %52, %1, %53 : vector<8x256xi1>, vector<8x256xf32>
    %cst_4 = arith.constant dense<0x7F800000> : vector<256xf32>
    %55 = vector.multi_reduction <minimumf>, %54, %cst_4 [0] : vector<8x256xf32> to vector<256xf32>
    %56 = vector.shape_cast %55 : vector<256xf32> to vector<1x256xf32>
    %cst_5 = arith.constant 0.000000e+00 : f32
    %57 = vector.broadcast %cst_5 : f32 to vector<1x256xf32>
    %58 = arith.maximumf %56, %57 : vector<1x256xf32>
    %59 = vector.broadcast %58 : vector<1x256xf32> to vector<8x256xf32>
    %60 = arith.cmpf oge, %1, %59 : vector<8x256xf32>
    %cst_6 = arith.constant 0.000000e+00 : f32
    %61 = vector.broadcast %cst_6 : f32 to vector<8x256xf32>
    %62 = arith.select %60, %1, %61 : vector<8x256xi1>, vector<8x256xf32>
    %c0_7 = arith.constant 0 : index
    %c0_8 = arith.constant 0 : index
    %c0_9 = arith.constant 0 : index
    %63 = vector.load %arg3[%c0_7, %c0_8, %c0_9] : memref<1x8x256xf32, #tpu.memory_space<vmem>>, vector<1x8x256xf32>
    %64 = vector.shape_cast %63 : vector<1x8x256xf32> to vector<8x256xf32>
    %65 = vector.shape_cast %62 : vector<8x256xf32> to vector<1x8x256xf32>
    tpu.vector_store %arg3[%c0_7, %c0_8, %c0_9], %65 {strides = array<i32>} : memref<1x8x256xf32, #tpu.memory_space<vmem>>, vector<1x8x256xf32>,
    return
  }
  func.func @transform_0(%arg0: i32, %arg1: i32) -> (i32, i32, i32) {
    %c0_i32 = arith.constant 0 : i32
    %c0_i32_0 = arith.constant 0 : i32
    return %arg0, %c0_i32, %arg1 : i32, i32, i32
  }
  func.func @transform_1(%arg0: i32, %arg1: i32) -> (i32, i32, i32) {
    %c0_i32 = arith.constant 0 : i32
    %c0_i32_0 = arith.constant 0 : i32
    return %arg0, %c0_i32, %arg1 : i32, i32, i32
  }
}

</mosaic_0001>

<bundles_post_ra>
// kernel: tpu_custom_call.1
= control target key start
LH: loop header
LB: loop body
LE: loop exit
PB: predicated region body
PF: predicated region fallthrough
CT: control target
= control target key end

     0   :  { %6 = vsyncpa [#allocation3], 0  ;;  %s817_s0 = inlined_call_operand.hbm [shape: f32[2,8,256], index: 0, kind: input, shape index: {}]   ;;  %s818_s1 = inlined_call_operand.hbm [shape: f32[2,8,256], index: 1, kind: output, shape index: {}]  }
   0x1   :  { %8 = vsyncpa [#allocation3 + $0x1], 0 }
   0x2   :  { %9 = vsyncpa [#allocation4], 0 }
   0x3   :  { %11 = vsyncpa [#allocation4 + $0x1], 0  ;;  %s627_s6 = smov 0   ;;  %s629_s7 = smov 0  }
   0x4   :  { %s631_s8 = smov 0   ;;  %s633_s9 = smov 0  }
   0x5   :  { %s635_s10 = smov 0   ;;  %s637_s11 = smov 0  }
   0x6 LB: > { %s408_s12 = sadd.s32 4294967295, %s612_s11   ;;  %s409_s13 = sadd.s32 4294967294, %s612_s11   ;;  %s612_s11 = sphi %s637_s11, %s17_s11   ;;  %s608_s10 = sphi %s635_s10, %s830_s10   ;;  %s604_s9 = sphi %s633_s9, %s829_s9   ;;  %s600_s8 = sphi %s631_s8, %s828_s8   ;;  %s596_s7 = sphi %s629_s7, %s827_s7   ;;  %s592_s6 = sphi %s627_s6, %s826_s6  }
   0x7   : > { %s29_s14 = sadd.s32 1, %s608_s10  ;;  %s38_s15 = sadd.s32 1, %s600_s8 }
   0x8   : > { %p31_p0 = scmp.ge.s32.totalorder %s29_s14, 2  ;;  %p45_p1 = scmp.ne.s32.totalorder %s600_s8, %s596_s7 }
   0x9   : > { %p46_p2 = scmp.eq.s32.totalorder %s612_s11, 0  ;;  %p51_p3 = scmp.ne.s32.totalorder %s596_s7, %s592_s6 }
   0xa   : > { %s832_s14 = smov (%p31_p0, %s29_s14), 0  ;;  %p52_p5 = scmp.eq.s32.totalorder %s408_s12, 0 }
   0xb   : > { %p668_p4 = por %p46_p2, %p45_p1  ;;  %s33_s17 = ssub.s32 %s608_s10, %s832_s14 }
   0xc   : > { %p77_p6 = scmp.eq.s32.totalorder %s408_s12, 1  ;;  %p36_p7 = scmp.eq.s32.totalorder %s33_s17, 0 }
   0xd   : > { %p674_p8 = por %p52_p5, %p51_p3  ;;  %p83_p10 = scmp.eq.s32.totalorder %s409_s13, 1 }
   0xe   : > { %p678_p9 = por %p77_p6, %p45_p1  ;;  %p453_p13 = scmp.lt.s32.totalorder %s612_s11, 2 }
   0xf   : > { %s683_s20 = scalar_select %p36_p7, %s600_s8, %s38_s15  }
  0x10   : > { %p685_p11 = por %p83_p10, %p51_p3  ;;  %s103_s22 = sand.u32 1, %s600_s8  }
  0x11   : > { %s412_s23 = sshll.u32 %s103_s22, 4  ;;  %s439_s24 = sshll.u32 %s608_s10, 8 }
  0x12   : > { %s822_s21 = scalar_select %p685_p11, 1, 0 }
  0x13   : > { %s115_s27 = scalar_lea.hbm %s817_s0, %s439_s24  ;;  %s107_s28 = scalar_lea.vmem [#allocation2], %s412_s23 }
  0x14   : > { %s117_s29 = sshll.u32 %s107_s28, 4  ;;  %p698_p0 = pnand %p453_p13, %p668_p4  ;;  %s118_s29 = int_to_ptr.vmem [resolvable:$true] %s117_s29 }
  0x15   : > { %p415_p1 = scmp.ge.s32.totalorder %s612_s11, 1  ;;  %p122_p2 = scmp.lt.s32.totalorder %s612_s11, 3 }
  0x16   : > { %s104_s2 = scalar_lea.sflag [#allocation3], %s103_s22  ;;  %p506_p3 = pneg %p698_p0 }
  0x17   : > { %s517_s3 = scalar_lea.vmem %s118_s29, 256  ;;  %s614_s4 = smov [#allocation2]  }
  0x18   : > { %p518_p5 = scmp.ne.s32.totalorder %s118_s29, %s517_s3  ;;  %s522_s5 = sshll.u32 %s614_s4, 4  ;;  %s523_s5 = int_to_ptr.vmem [resolvable:$false] %s522_s5 }
  0x19   : > { %s524_s12 = scalar_lea.vmem %s523_s5, 512  ;;  %p525_p10 = scmp.lt.s32.totalorder %s118_s29, %s523_s5 }
  0x1a   : > { %p520_p6 = pnand %p518_p5, %p506_p3  ;;  %p526_p12 = scmp.lt.s32.totalorder %s524_s12, %s517_s3 }
  0x1c   : > { %p521_p7 = pneg %p520_p6  ;;  %p527_p4 = por %p526_p12, %p525_p10 }
  0x1e   : > { %p528_p13 = pnand %p527_p4, %p521_p7 }
  0x20   : > { %531 = shalt.err (!%p528_p13)
}
  0x21   : > { %448 = dma.hbm_to_vmem [thread:$0]  (!%p698_p0), %s115_s27, 256, %s118_s29, %s104_s2  }
  0x22   : > { %p123_p11 = pnand %p415_p1, %p122_p2 }
  0x23   : > { %s713_s13 = sand.u32 (!%p123_p11), 1, %s596_s7  }
  0x24   : > { %126 = sbr.rel (%p123_p11) target bundleno = 102 (0x66), region = 24  ;;  %s416_s15 = sshll.u32 (!%p123_p11), %s713_s13, 4 }
  0x25   : > { %s129_s16 = scalar_lea.sflag (!%p123_p11), [#allocation3], %s713_s13  ;;  %s132_s17 = scalar_lea.vmem (!%p123_p11), [#allocation2], %s416_s15 }
  0x29   : > { %583 = dma.done.wait (%p674_p8), %s129_s16, 256  }
  0x2a   : > { %585 = vsyncadd (%p674_p8), %s129_s16, 4294967040  ;;  %v155_v0 = vlaneseq  ;;  %v723_v9 = vld [vmem:[%s132_s17] sm:$0xff]  ;;  %v736_v18 = vld [vmem:[%s132_s17 + $0x8] sm:$0xff]  ;;  %v615_v19 = vmov 0.0   ;;  %s150_s18 = scalar_lea.vmem [#allocation5], %s416_s15  ;;  %s440_s23 = sshll.u32 %s604_s9, 8 }
  0x2b   : > { %s324_s22 = sshll.u32 %s150_s18, 4  ;;  %s322_s26 = scalar_lea.hbm %s818_s1, %s440_s23  ;;  %s770_s22 = int_to_ptr.vmem [resolvable:$true] %s324_s22 }
  0x2c   : > { %v156_v1 = vshrl.u32 %v155_v0, 7  ;;  %s308_s27 = scalar_lea.sflag [#allocation4], %s713_s13  ;;  %s532_s28 = scalar_lea.vmem %s770_s22, 256 }
  0x2d   : > { %p533_p8 = scmp.ne.s32.totalorder %s770_s22, %s532_s28  ;;  %s616_s9 = smov [#allocation5]  }
  0x2e   : > { %v157_v2 = vsub.s32 0, %v156_v1  ;;  %v173_v3 = vsub.s32 1, %v156_v1  ;;  %v189_v4 = vsub.s32 2, %v156_v1  ;;  %v205_v5 = vsub.s32 3, %v156_v1  ;;  %s536_s29 = sshll.u32 %s616_s9, 4  ;;  %s537_s29 = int_to_ptr.vmem [resolvable:$false] %s536_s29 }
  0x2f   : > { %v221_v6 = vsub.s32 4, %v156_v1  ;;  %v237_v7 = vsub.s32 5, %v156_v1  ;;  %v253_v8 = vsub.s32 6, %v156_v1  ;;  %v269_v10 = vsub.s32 7, %v156_v1  ;;  %p534_p11 = pnand %p533_p8, %p678_p9  ;;  %s538_s30 = scalar_lea.vmem %s537_s29, 512 }
  0x30   : > { %v158_v11 = vrot.slane %v723_v9, %v157_v2  ;;  %v174_v12 = vrot.slane %v723_v9, %v173_v3  ;;  %v190_v13 = vrot.slane %v723_v9, %v189_v4  ;;  %v206_v14 = vrot.slane %v723_v9, %v205_v5  ;;  %p539_p0 = scmp.lt.s32.totalorder %s770_s22, %s537_s29  ;;  %p540_p1 = scmp.lt.s32.totalorder %s538_s30, %s532_s28 }
  0x31   : > { %v222_v15 = vrot.slane %v723_v9, %v221_v6  ;;  %v238_v16 = vrot.slane %v723_v9, %v237_v7  ;;  %v254_v17 = vrot.slane %v723_v9, %v253_v8  ;;  %v270_v23 = vrot.slane %v723_v9, %v269_v10  ;;  %p535_p12 = pneg %p534_p11 }
  0x32   : > { %vm163_vm0 = vcmp.gt.f32.partialorder %v158_v11, %v723_v9  ;;  %vm179_vm1 = vcmp.gt.f32.partialorder %v174_v12, %v723_v9  ;;  %vm195_vm2 = vcmp.gt.f32.partialorder %v190_v13, %v723_v9  ;;  %vm211_vm3 = vcmp.gt.f32.partialorder %v206_v14, %v723_v9  ;;  %p541_p2 = por %p540_p1, %p539_p0 }
  0x33   : > { %v418_v20 = vsel %vm163_vm0, 1.0, %v615_v19  ;;  %v420_v21 = vsel %vm179_vm1, 1.0, %v615_v19  ;;  %v422_v22 = vsel %vm195_vm2, 1.0, %v615_v19  ;;  %vm227_vm4 = vcmp.gt.f32.partialorder %v222_v15, %v723_v9 }
  0x34   : > { %v185_v24 = vadd.f32 %v420_v21, %v418_v20  ;;  %vm243_vm5 = vcmp.gt.f32.partialorder %v238_v16, %v723_v9  ;;  %v424_v25 = vsel %vm211_vm3, 1.0, %v615_v19  ;;  %v426_v26 = vsel %vm227_vm4, 1.0, %v615_v19  ;;  %p542_p3 = pnand %p541_p2, %p535_p12 }
  0x35   : > { %vm259_vm6 = vcmp.gt.f32.partialorder %v254_v17, %v723_v9  ;;  %v428_v28 = vsel %vm243_vm5, 1.0, %v615_v19  ;;  %v162_v29 = vrot.slane %v736_v18, %v157_v2  ;;  %v178_v30 = vrot.slane %v736_v18, %v173_v3 }
  0x36   : > { %v201_v27 = vadd.f32 %v422_v22, %v185_v24  ;;  %vm275_vm7 = vcmp.gt.f32.partialorder %v270_v23, %v723_v9  ;;  %v194_v31 = vrot.slane %v736_v18, %v189_v4  ;;  %v210_v32 = vrot.slane %v736_v18, %v205_v5 }
  0x37   : > { %v226_v33 = vrot.slane %v736_v18, %v221_v6  ;;  %vm164_vm8 = vcmp.gt.f32.partialorder %v162_v29, %v736_v18  ;;  %vm180_vm9 = vcmp.gt.f32.partialorder %v178_v30, %v736_v18  ;;  %v242_v35 = vrot.slane %v736_v18, %v237_v7 }
  0x38   : > { %v217_v34 = vadd.f32 %v424_v25, %v201_v27  ;;  %v419_v36 = vsel %vm164_vm8, 1.0, %v615_v19  ;;  %v421_v37 = vsel %vm180_vm9, 1.0, %v615_v19  ;;  %vm196_vm10 = vcmp.gt.f32.partialorder %v194_v31, %v736_v18 }
  0x39   : > { %vm212_vm11 = vcmp.gt.f32.partialorder %v210_v32, %v736_v18  ;;  %v186_v39 = vadd.f32 %v421_v37, %v419_v36  ;;  %v423_v40 = vsel %vm196_vm10, 1.0, %v615_v19  ;;  %v258_v41 = vrot.slane %v736_v18, %v253_v8 }
  0x3a   : > { %v233_v38 = vadd.f32 %v426_v26, %v217_v34  ;;  %v430_v42 = vsel %vm259_vm6, 1.0, %v615_v19  ;;  %v425_v43 = vsel %vm212_vm11, 1.0, %v615_v19  ;;  %vm228_vm12 = vcmp.gt.f32.partialorder %v226_v33, %v736_v18 }
  0x3b   : > { %v202_v45 = vadd.f32 %v423_v40, %v186_v39  ;;  %vm244_vm13 = vcmp.gt.f32.partialorder %v242_v35, %v736_v18  ;;  %v274_v46 = vrot.slane %v736_v18, %v269_v10  ;;  %v432_v47 = vsel %vm275_vm7, 1.0, %v615_v19 }
  0x3c   : > { %v249_v44 = vadd.f32 %v428_v28, %v233_v38  ;;  %v427_v48 = vsel %vm228_vm12, 1.0, %v615_v19  ;;  %vm260_vm14 = vcmp.gt.f32.partialorder %v258_v41, %v736_v18  ;;  %v429_v51 = vsel %vm244_vm13, 1.0, %v615_v19 }
  0x3d   : > { %v218_v50 = vadd.f32 %v425_v43, %v202_v45  ;;  %vm276_vm15 = vcmp.gt.f32.partialorder %v274_v46, %v736_v18  ;;  %v431_v54 = vsel %vm260_vm14, 1.0, %v615_v19 }
  0x3e   : > { %v265_v49 = vadd.f32 %v430_v42, %v249_v44  ;;  %v433_v57 = vsel %vm276_vm15, 1.0, %v615_v19 }
  0x3f   : > { %v234_v53 = vadd.f32 %v427_v48, %v218_v50 }
  0x40   : > { %v281_v52 = vadd.f32 %v432_v47, %v265_v49 }
  0x41   : > { %v250_v55 = vadd.f32 %v429_v51, %v234_v53 }
  0x42   : > { %vm283_vm0 = vcmp.lt.f32.partialorder %v281_v52, 4.0 }
  0x43   : > { %v285_v56 = vsel %vm283_vm0, %v723_v9, inf  ;;  %v266_v59 = vadd.f32 %v431_v54, %v250_v55 }
  0x44   : > { %v287_v58 = vrot.slane %v285_v56, 4 }
  0x45   : > { %v282_v61 = vadd.f32 %v433_v57, %v266_v59 }
  0x46   : > { %v288_v60 = vmin.f32 %v285_v56, %v287_v58 }
  0x47   : > { %vm284_vm1 = vcmp.lt.f32.partialorder %v282_v61, 4.0 }
  0x48   : > { %v289_v62 = vrot.slane %v288_v60, 2  ;;  %v286_v63 = vsel %vm284_vm1, %v736_v18, inf }
  0x49   : > { %v293_v1 = vrot.slane %v286_v63, 4 }
  0x4a   : > { %v290_v0 = vmin.f32 %v288_v60, %v289_v62 }
  0x4b   : > { %v294_v3 = vmin.f32 %v286_v63, %v293_v1 }
  0x4c   : > { %v291_v2 = vrot.slane %v290_v0, 1 }
  0x4d   : > { %v295_v5 = vrot.slane %v294_v3, 2 }
  0x4e   : > { %v292_v4 = vmin.f32 %v290_v0, %v291_v2 }
  0x4f   : > { %v296_v7 = vmin.f32 %v294_v3, %v295_v5 }
  0x50   : > { %v299_v6 = vmax.f32 %v292_v4, 0.0 }
  0x51   : > { %v297_v8 = vrot.slane %v296_v7, 1 }
  0x52   : > { %vm301_vm2 = vcmp.ge.f32.partialorder %v723_v9, %v299_v6 }
  0x53   : > { %v303_v10 = vsel %vm301_vm2, %v723_v9, 0.0  ;;  %v298_v11 = vmin.f32 %v296_v7, %v297_v8 }
  0x54   : > { %305 = vst [vmem:[%s150_s18] sm:$0xff] %v303_v10 }
  0x55   : > { %v300_v12 = vmax.f32 %v298_v11, 0.0 }
  0x57   : > { %vm302_vm3 = vcmp.ge.f32.partialorder %v736_v18, %v300_v12 }
  0x58   : > { %v304_v9 = vsel %vm302_vm3, %v736_v18, 0.0 }
  0x59   : > { %306 = vst [vmem:[%s150_s18 + $0x8] sm:$0xff] %v304_v9 }
  0x5a   : > { %545 = shalt.err (!%p542_p3)
}
  0x5b   : > { %s546_s2 = scalar_lea.hbm %s322_s26, 256  ;;  %s550_s5 = scalar_lea.hbm %s818_s1, 512 }
  0x5c   : > { %p547_p5 = scmp.ne.s32.totalorder %s322_s26, %s546_s2  ;;  %p551_p10 = scmp.lt.s32.totalorder %s322_s26, %s818_s1 }
  0x5d   : > { %p552_p4 = scmp.lt.s32.totalorder %s550_s5, %s546_s2 }
  0x5e   : > { %p548_p6 = pnand %p547_p5, %p678_p9 }
  0x5f   : > { %p553_p13 = por %p552_p4, %p551_p10 }
  0x60   : > { %p549_p7 = pneg %p548_p6 }
  0x62   : > { %p554_p8 = pnand %p553_p13, %p549_p7 }
  0x64   : > { %557 = shalt.err (!%p554_p8)
}
  0x65   : > { %443 = dma.vmem_to_hbm [thread:$0]  (%p678_p9), %s770_s22, 256, %s322_s26, %s308_s27  }
  0x66 PF: > { %s336_s15 = sand.u32 1, %s592_s6   ;;  %p824_p11 = scmp.ne.s32.totalorder %s822_s21, 0 }
  0x67   : > { %p825_p12 = scmp.ge.s32.totalorder %s612_s11, 2  ;;  %s337_s16 = scalar_lea.sflag [#allocation4], %s336_s15 }
  0x69   : > { %p450_p0 = pnand %p825_p12, %p824_p11 }
  0x6b   : > { %p451_p1 = pneg %p450_p0 }
  0x6d   : > { %587 = dma.done.wait (%p451_p1), %s337_s16, 256  }
  0x6e   : > { %589 = vsyncadd (%p451_p1), %s337_s16, 4294967040  ;;  %s17_s11 = sadd.s32 1, %s612_s11   ;;  %s826_s6 = smov %s596_s7 }
  0x6f   : > { %p14_p2 = scmp.ge.s32.totalorder %s17_s11, 4   ;;  %s827_s7 = smov %s600_s8 }
  0x70   : > { %s828_s8 = smov %s683_s20  ;;  %s829_s9 = smov %s608_s10 }
  0x71   : > { %s830_s10 = smov %s832_s14  ;;  %16 = sbr.rel (!%p14_p2) target bundleno = 6 (0x6), region = 69 }
  0x76   :  { %342 = vsyncpa [#allocation3], 1 }
  0x77   :  { %344 = vsyncpa [#allocation3 + $0x1], 1 }
  0x78   :  { %345 = vsyncpa [#allocation4], 1 }
  0x79   :  { %347 = vsyncpa [#allocation4 + $0x1], 1 }

</bundles_post_ra>
